<compile_context>
chip_gen: v7x
topology: tpu7x:2x2x1
jax: 0.10.0
libtpu: 0.0.40
codegen_flags: <defaults>
</compile_context>

<pallas_src>
import functools

import jax
import jax.numpy as jnp
from jax.experimental import pallas as pl
from jax.experimental.pallas import tpu as pltpu

LANE = 128          # TPU lane width
DEFAULT_TM = 1024   # max batch rows per grid step (sweepable; <=1024 keeps v5e happy)


def _round_up(n, m):
    return ((n + m - 1) // m) * m


def _mlp_kernel(x_ref, w1_ref, b1_ref, w2_ref, b2_ref, w3_ref, b3_ref, o_ref,
                *, compute_dtype):
    # One batch tile per grid step; all three matmuls fused, activations stay in vregs.
    # Cast x in-kernel (HBM traffic stays at the input dtype's 4 B/elem).
    x = x_ref[...].astype(compute_dtype)

    h1 = jnp.dot(x, w1_ref[...], preferred_element_type=jnp.float32) + b1_ref[...]
    h1 = jnp.maximum(h1, 0.0)                     # ReLU (f32)
    # Dropout(0.5): identity in eval mode.
    # TODO(synk): train-mode dropout would need pltpu.prng_* and cannot match torch RNG.

    h2 = jnp.dot(h1.astype(w2_ref.dtype), w2_ref[...],
                 preferred_element_type=jnp.float32) + b2_ref[...]
    h2 = jnp.maximum(h2, 0.0)                     # ReLU
    # Dropout(0.5): identity in eval mode.

    out = jnp.dot(h2.astype(w3_ref.dtype), w3_ref[...],
                  preferred_element_type=jnp.float32) + b3_ref[...]
    o_ref[...] = out.astype(o_ref.dtype)          # lane-dense (TM_eff, 128) store


@functools.partial(jax.jit, static_argnames=("compute_dtype", "tm"))
def simple_classifier_forward(x, w1, b1, w2, b2, w3, b3,
                              compute_dtype=jnp.float32, tm=DEFAULT_TM):
    """x: [B, C, H, W] float32 -> logits [B, num_classes] float32."""
    batch = x.shape[0]
    in_features, hidden = w1.shape
    num_classes = w3.shape[1]

    # torch: x.view(x.size(0), -1).  No pad, no cast — x streams to the kernel as-is.
    x_flat = x.reshape(batch, -1)

    # Lane-dense output: pad only the tiny last-layer weight/bias to 128 columns.
    n_pad = _round_up(max(num_classes, LANE), LANE)      # 10 -> 128
    w3_p = jnp.pad(w3, ((0, 0), (0, n_pad - num_classes)))
    b3_p = jnp.pad(b3, ((0, 0), (0, n_pad - num_classes)))

    # Weight casts are essentially free (~0.6 MB total); biases/accumulation stay f32.
    w1_c = w1.astype(compute_dtype)
    w2_c = w2.astype(compute_dtype)
    w3_c = w3_p.astype(compute_dtype)
    b1_f = b1.astype(jnp.float32)
    b2_f = b2.astype(jnp.float32)
    b3_f = b3_p.astype(jnp.float32)

    # Adaptive batch tile: no huge padding for small batches; ensure >=2 grid steps
    # when the batch is big enough so v7x megacore sharding has work for both cores.
    tm_eff = min(tm, _round_up(batch, 8))
    if pl.cdiv(batch, tm_eff) < 2 and batch > 8:
        tm_eff = max(8, _round_up(-(-batch // 2), 8))
    grid = (pl.cdiv(batch, tm_eff),)

    x_item = jnp.dtype(x_flat.dtype).itemsize
    w_item = jnp.dtype(compute_dtype).itemsize
    flops = 2 * batch * (in_features * hidden + hidden * hidden + hidden * n_pad)
    bytes_accessed = (
        batch * in_features * x_item                                      # x stream
        + (in_features * hidden + hidden * hidden + hidden * n_pad) * w_item  # weights
        + (2 * hidden + n_pad) * 4                                        # biases
        + batch * n_pad * 4                                               # output
    )

    kernel = functools.partial(_mlp_kernel, compute_dtype=compute_dtype)

    out = pl.pallas_call(
        kernel,
        out_shape=jax.ShapeDtypeStruct((batch, n_pad), jnp.float32),
        grid=grid,
        in_specs=[
            # x tile: pipelined per grid step; K = 784 = full array dim (no pad needed).
            pl.BlockSpec((tm_eff, in_features), lambda i: (i, 0)),
            # weights/biases: constant index maps -> VMEM-resident across steps.
            pl.BlockSpec((in_features, hidden), lambda i: (0, 0)),
            pl.BlockSpec((1, hidden), lambda i: (0, 0)),
            pl.BlockSpec((hidden, hidden), lambda i: (0, 0)),
            pl.BlockSpec((1, hidden), lambda i: (0, 0)),
            pl.BlockSpec((hidden, n_pad), lambda i: (0, 0)),
            pl.BlockSpec((1, n_pad), lambda i: (0, 0)),
        ],
        out_specs=pl.BlockSpec((tm_eff, n_pad), lambda i: (i, 0)),
        compiler_params=pltpu.CompilerParams(
            dimension_semantics=("parallel",),   # megacore sharding on v7x
        ),
        cost_estimate=pl.CostEstimate(
            flops=flops, transcendentals=0, bytes_accessed=bytes_accessed
        ),
    )(x_flat, w1_c, b1_f, w2_c, b2_f, w3_c, b3_f)

    return out[:, :num_classes]


def init_params(key, input_size=784, hidden_size=128, num_classes=10):
    """Deterministic init mimicking nn.Linear's U(-1/sqrt(fan_in), 1/sqrt(fan_in))."""
    ks = jax.random.split(key, 6)

    def linear(kw, kb, fan_in, fan_out):
        bound = 1.0 / jnp.sqrt(fan_in)
        w = jax.random.uniform(kw, (fan_in, fan_out), jnp.float32, -bound, bound)
        b = jax.random.uniform(kb, (1, fan_out), jnp.float32, -bound, bound)
        return w, b

    w1, b1 = linear(ks[0], ks[1], input_size, hidden_size)
    w2, b2 = linear(ks[2], ks[3], hidden_size, hidden_size)
    w3, b3 = linear(ks[4], ks[5], hidden_size, num_classes)
    return w1, b1, w2, b2, w3, b3


if __name__ == "__main__":
    key = jax.random.PRNGKey(0)
    k_x, k_p = jax.random.split(key)

    # Small MNIST-like input: batch=2, 1x28x28 -> flattened 784 features.
    x = jax.random.normal(k_x, (2, 1, 28, 28), dtype=jnp.float32)
    params = init_params(k_p, input_size=784, hidden_size=128, num_classes=10)

    # Default f32 path: matches the torch/plain-JAX reference tightly.
    logits = simple_classifier_forward(x, *params)
    jax.block_until_ready(logits)

    w1, b1, w2, b2, w3, b3 = params
    xf = x.reshape(x.shape[0], -1)
    ref = jnp.maximum(xf @ w1 + b1, 0.0)
    ref = jnp.maximum(ref @ w2 + b2, 0.0)
    ref = ref @ w3 + b3
    assert logits.shape == (2, 10)
    assert jnp.allclose(logits, ref, atol=1e-4, rtol=1e-4)

    # Optional bf16 fast path (in-kernel cast of x, bf16 weights, f32 accumulation).
    logits_bf16 = simple_classifier_forward(x, *params, compute_dtype=jnp.bfloat16)
    jax.block_until_ready(logits_bf16)
    assert logits_bf16.shape == (2, 10)
    assert jnp.allclose(logits_bf16, ref, atol=0.3, rtol=0.1)

    print("KERNEL_OK")
</pallas_src>

<mosaic_0001>
module attributes {stable_mosaic.version = 11 : i64} {
  func.func @_mlp_kernel(%arg0: i32, %arg1: memref<8x784xf32, #tpu.memory_space<vmem>>, %arg2: memref<784x128xf32, #tpu.memory_space<vmem>>, %arg3: memref<1x128xf32, #tpu.memory_space<vmem>>, %arg4: memref<128x128xf32, #tpu.memory_space<vmem>>, %arg5: memref<1x128xf32, #tpu.memory_space<vmem>>, %arg6: memref<128x128xf32, #tpu.memory_space<vmem>>, %arg7: memref<1x128xf32, #tpu.memory_space<vmem>>, %arg8: memref<8x128xf32, #tpu.memory_space<vmem>>) attributes {dimension_semantics = [#tpu.dimension_semantics<parallel>], iteration_bounds = array<i64: 1>, scalar_prefetch = 0 : i64, scratch_operands = 0 : i64, tpu.core_type = #tpu.core_type<tc>, window_params = [{transform_indices = @transform_0, window_bounds = array<i64: 8, 784>}, {pipeline_mode = #tpu.pipeline_mode<synchronous>, transform_indices = @transform_1, window_bounds = array<i64: 784, 128>}, {pipeline_mode = #tpu.pipeline_mode<synchronous>, transform_indices = @transform_2, window_bounds = array<i64: 1, 128>}, {pipeline_mode = #tpu.pipeline_mode<synchronous>, transform_indices = @transform_3, window_bounds = array<i64: 128, 128>}, {pipeline_mode = #tpu.pipeline_mode<synchronous>, transform_indices = @transform_4, window_bounds = array<i64: 1, 128>}, {pipeline_mode = #tpu.pipeline_mode<synchronous>, transform_indices = @transform_5, window_bounds = array<i64: 128, 128>}, {pipeline_mode = #tpu.pipeline_mode<synchronous>, transform_indices = @transform_6, window_bounds = array<i64: 1, 128>}, {transform_indices = @transform_7, window_bounds = array<i64: 8, 128>}]} {
    %c0 = arith.constant 0 : index
    %c0_0 = arith.constant 0 : index
    %0 = vector.load %arg1[%c0, %c0_0] : memref<8x784xf32, #tpu.memory_space<vmem>>, vector<8x784xf32>
    %c0_1 = arith.constant 0 : index
    %c0_2 = arith.constant 0 : index
    %1 = vector.load %arg2[%c0_1, %c0_2] : memref<784x128xf32, #tpu.memory_space<vmem>>, vector<784x128xf32>
    %cst = arith.constant dense<0.000000e+00> : vector<8x128xf32>
    %2 = tpu.matmul %0, %1, %cst {dimension_numbers = #tpu.dot_dimension_numbers<[1], [0], [0], [1], [0, 0, 1, 1], [], []>} : vector<8x784xf32>, vector<784x128xf32>, vector<8x128xf32> -> vector<8x128xf32>
    %c0_3 = arith.constant 0 : index
    %c0_4 = arith.constant 0 : index
    %3 = vector.load %arg3[%c0_3, %c0_4] : memref<1x128xf32, #tpu.memory_space<vmem>>, vector<1x128xf32>
    %4 = vector.broadcast %3 : vector<1x128xf32> to vector<8x128xf32>
    %5 = arith.addf %2, %4 : vector<8x128xf32>
    %cst_5 = arith.constant 0.000000e+00 : f32
    %6 = vector.broadcast %cst_5 : f32 to vector<8x128xf32>
    %7 = arith.maximumf %5, %6 : vector<8x128xf32>
    %c0_6 = arith.constant 0 : index
    %c0_7 = arith.constant 0 : index
    %8 = vector.load %arg4[%c0_6, %c0_7] : memref<128x128xf32, #tpu.memory_space<vmem>>, vector<128x128xf32>
    %cst_8 = arith.constant dense<0.000000e+00> : vector<8x128xf32>
    %9 = tpu.matmul %7, %8, %cst_8 {dimension_numbers = #tpu.dot_dimension_numbers<[1], [0], [0], [1], [0, 0, 1, 1], [], []>} : vector<8x128xf32>, vector<128x128xf32>, vector<8x128xf32> -> vector<8x128xf32>
    %c0_9 = arith.constant 0 : index
    %c0_10 = arith.constant 0 : index
    %10 = vector.load %arg5[%c0_9, %c0_10] : memref<1x128xf32, #tpu.memory_space<vmem>>, vector<1x128xf32>
    %11 = vector.broadcast %10 : vector<1x128xf32> to vector<8x128xf32>
    %12 = arith.addf %9, %11 : vector<8x128xf32>
    %cst_11 = arith.constant 0.000000e+00 : f32
    %13 = vector.broadcast %cst_11 : f32 to vector<8x128xf32>
    %14 = arith.maximumf %12, %13 : vector<8x128xf32>
    %c0_12 = arith.constant 0 : index
    %c0_13 = arith.constant 0 : index
    %15 = vector.load %arg6[%c0_12, %c0_13] : memref<128x128xf32, #tpu.memory_space<vmem>>, vector<128x128xf32>
    %cst_14 = arith.constant dense<0.000000e+00> : vector<8x128xf32>
    %16 = tpu.matmul %14, %15, %cst_14 {dimension_numbers = #tpu.dot_dimension_numbers<[1], [0], [0], [1], [0, 0, 1, 1], [], []>} : vector<8x128xf32>, vector<128x128xf32>, vector<8x128xf32> -> vector<8x128xf32>
    %c0_15 = arith.constant 0 : index
    %c0_16 = arith.constant 0 : index
    %17 = vector.load %arg7[%c0_15, %c0_16] : memref<1x128xf32, #tpu.memory_space<vmem>>, vector<1x128xf32>
    %18 = vector.broadcast %17 : vector<1x128xf32> to vector<8x128xf32>
    %19 = arith.addf %16, %18 : vector<8x128xf32>
    %c0_17 = arith.constant 0 : index
    %c0_18 = arith.constant 0 : index
    %20 = vector.load %arg8[%c0_17, %c0_18] : memref<8x128xf32, #tpu.memory_space<vmem>>, vector<8x128xf32>
    tpu.vector_store %arg8[%c0_17, %c0_18], %19 {strides = array<i32>} : memref<8x128xf32, #tpu.memory_space<vmem>>, vector<8x128xf32>,
    return
  }
  func.func @transform_0(%arg0: i32) -> (i32, i32) {
    %c0_i32 = arith.constant 0 : i32
    %c0_i32_0 = arith.constant 0 : i32
    return %arg0, %c0_i32 : i32, i32
  }
  func.func @transform_1(%arg0: i32) -> (i32, i32) {
    %c0_i32 = arith.constant 0 : i32
    %c0_i32_0 = arith.constant 0 : i32
    %c0_i32_1 = arith.constant 0 : i32
    return %c0_i32, %c0_i32_0 : i32, i32
  }
  func.func @transform_2(%arg0: i32) -> (i32, i32) {
    %c0_i32 = arith.constant 0 : i32
    %c0_i32_0 = arith.constant 0 : i32
    %c0_i32_1 = arith.constant 0 : i32
    return %c0_i32, %c0_i32_0 : i32, i32
  }
  func.func @transform_3(%arg0: i32) -> (i32, i32) {
    %c0_i32 = arith.constant 0 : i32
    %c0_i32_0 = arith.constant 0 : i32
    %c0_i32_1 = arith.constant 0 : i32
    return %c0_i32, %c0_i32_0 : i32, i32
  }
  func.func @transform_4(%arg0: i32) -> (i32, i32) {
    %c0_i32 = arith.constant 0 : i32
    %c0_i32_0 = arith.constant 0 : i32
    %c0_i32_1 = arith.constant 0 : i32
    return %c0_i32, %c0_i32_0 : i32, i32
  }
  func.func @transform_5(%arg0: i32) -> (i32, i32) {
    %c0_i32 = arith.constant 0 : i32
    %c0_i32_0 = arith.constant 0 : i32
    %c0_i32_1 = arith.constant 0 : i32
    return %c0_i32, %c0_i32_0 : i32, i32
  }
  func.func @transform_6(%arg0: i32) -> (i32, i32) {
    %c0_i32 = arith.constant 0 : i32
    %c0_i32_0 = arith.constant 0 : i32
    %c0_i32_1 = arith.constant 0 : i32
    return %c0_i32, %c0_i32_0 : i32, i32
  }
  func.func @transform_7(%arg0: i32) -> (i32, i32) {
    %c0_i32 = arith.constant 0 : i32
    %c0_i32_0 = arith.constant 0 : i32
    return %arg0, %c0_i32 : i32, i32
  }
}

</mosaic_0001>

<bundles_post_ra>
// kernel: simple_classifier_forward.1
= control target key start
LH: loop header
LB: loop body
LE: loop exit
PB: predicated region body
PF: predicated region fallthrough
CT: control target
= control target key end

     0   :  { %12 = vsyncpa [#allocation3], 0  ;;  %s1401_s0 = inlined_call_operand.vmem [shape: f32[2,784], index: 0, kind: input, shape index: {}]   ;;  %s1402_s1 = inlined_call_operand.hbm [shape: f32[784,128], index: 1, kind: input, shape index: {}]   ;;  %s1403_s2 = inlined_call_operand.vmem [shape: f32[1,128], index: 2, kind: input, shape index: {}]   ;;  %s1404_s3 = inlined_call_operand.vmem [shape: f32[128,128], index: 3, kind: input, shape index: {}]   ;;  %s1405_s4 = inlined_call_operand.vmem [shape: f32[1,128], index: 4, kind: input, shape index: {}]   ;;  %s1406_s5 = inlined_call_operand.vmem [shape: f32[128,128], index: 5, kind: input, shape index: {}]   ;;  %s1407_s6 = inlined_call_operand.vmem [shape: f32[1,128], index: 6, kind: input, shape index: {}]   ;;  %s1408_s7 = inlined_call_operand.hbm [shape: f32[2,128], index: 7, kind: output, shape index: {}]  }
   0x1   :  { %13 = vsyncpa [#allocation4], 0  ;;  %s1168_s24 = smov [#allocation2]   ;;  %s1120_s28 = scalar_lea.hbm %s1402_s1, 12544 }
   0x2   :  { %s21_s25 = sshll.u32 %s1168_s24, 4  ;;  %p1121_p0 = scmp.ne.s32.totalorder %s1402_s1, %s1120_s28  ;;  %s22_s25 = int_to_ptr.vmem [resolvable:$true] %s21_s25 }
   0x3   :  { %p1124_p1 = scmp.lt.u32.totalorder %s1120_s28, %s1402_s1 }
   0x5   :  { %p1126_p2 = pnand %p1124_p1, %p1121_p0 }
   0x7   :  { %1129 = shalt.err (!%p1126_p2)
}
   0x8   :  { %s1130_s10 = scalar_lea.vmem %s22_s25, 12544  ;;  %p1135_p4 = scmp.lt.s32.totalorder %s22_s25, %s22_s25 }
   0x9   :  { %p1131_p3 = scmp.ne.s32.totalorder %s22_s25, %s1130_s10  ;;  %p1136_p5 = scmp.lt.s32.totalorder %s1130_s10, %s1130_s10 }
   0xb   :  { %p1137_p6 = por %p1136_p5, %p1135_p4 }
   0xd   :  { %p1138_p7 = pnand %p1137_p6, %p1131_p3 }
   0xf   :  { %1141 = shalt.err (!%p1138_p7)
}
  0x10   :  { %s1169_s11 = smov 128   ;;  %s1170_s12 = smov 8  }
  0x11   :  { %27 = dma.hbm_to_vmem [thread:$0]  %s1402_s1, 12544, %s22_s25, [#allocation3], %s1169_s11, %s1169_s11, %s1170_s12  }
  0x12   :  { %1164 = dma.done.wait [#allocation3], 12544  }
  0x13   :  { %1165 = vsyncadd [#allocation3], 4294954752  ;;  %v65_v0 = vld [vmem:[#allocation2 + $0x80] sm:$0xff]  ;;  %v66_v1 = vld [vmem:[#allocation2 + $0x88] sm:$0xff]  ;;  %v1171_v51 = vmov 1983009808   ;;  %v169_v53 = vlaneseq }
  0x14   :  { %v49_v2 = vld [vmem:[#allocation2] sm:$0xff]  ;;  %v951_v3 = vpack.c.bf16 %v66_v1, %v65_v0  ;;  %v50_v4 = vld [vmem:[#allocation2 + $0x8] sm:$0xff]  ;;  %v67_v11 = vld [vmem:[#allocation2 + $0x90] sm:$0xff]  ;;  %v167_v52 = vunpack.c.l.s4 %v1171_v51  ;;  %vm1173_vm0 = vmmov 0   ;;  %vm239_vm1 = vcmask 130048  }
  0x15   :  { %v97_v5 = vld [vmem:[#allocation2 + $0x180] sm:$0xff]  ;;  %v98_v6 = vld [vmem:[#allocation2 + $0x188] sm:$0xff]  ;;  %v953_v7 = vpack.c.bf16 %v50_v4, %v49_v2  ;;  %v68_v13 = vld [vmem:[#allocation2 + $0x98] sm:$0xff] }
  0x16   :  { %v983_v8 = vpack.c.bf16 %v98_v6, %v97_v5  ;;  %v81_v9 = vld [vmem:[#allocation2 + $0x100] sm:$0xff]  ;;  %v82_v10 = vld [vmem:[#allocation2 + $0x108] sm:$0xff]  ;;  %952 = vmatprep.subr.bf16.mxu0 %v951_v3  ;;  %v51_v14 = vld [vmem:[#allocation2 + $0x10] sm:$0xff]  ;;  %v955_v16 = vpack.c.bf16 %v68_v13, %v67_v11  ;;  %v168_v2 = vunpack.c.0.s8 %v167_v52  ;;  %v170_v3 = vshrl.u32 %v169_v53, 7 }
  0x17   :  { %v985_v12 = vpack.c.bf16 %v82_v10, %v81_v9  ;;  %v52_v15 = vld [vmem:[#allocation2 + $0x18] sm:$0xff]  ;;  %954 = vmatpush3.bf16.msra.mxu0 %v953_v7  ;;  %v99_v18 = vld [vmem:[#allocation2 + $0x190] sm:$0xff]  ;;  %v69_v23 = vld [vmem:[#allocation2 + $0xa0] sm:$0xff] }
  0x18   :  { %984 = vmatprep.subr.bf16.mxu1 %v983_v8  ;;  %v957_v17 = vpack.c.bf16 %v52_v15, %v51_v14  ;;  %v100_v19 = vld [vmem:[#allocation2 + $0x198] sm:$0xff]  ;;  %v83_v20 = vld [vmem:[#allocation2 + $0x110] sm:$0xff]  ;;  %v70_v24 = vld [vmem:[#allocation2 + $0xa8] sm:$0xff]  ;;  %956 = vmatprep.subr.bf16.mxu0 %v955_v16 }
  0x19   :  { %986 = vmatpush3.bf16.msra.mxu1 %v985_v12  ;;  %v987_v21 = vpack.c.bf16 %v100_v19, %v99_v18  ;;  %v84_v22 = vld [vmem:[#allocation2 + $0x118] sm:$0xff]  ;;  %v959_v26 = vpack.c.bf16 %v70_v24, %v69_v23  ;;  %v53_v27 = vld [vmem:[#allocation2 + $0x20] sm:$0xff]  ;;  %v54_v28 = vld [vmem:[#allocation2 + $0x28] sm:$0xff] }
  0x1a   :  { %v989_v25 = vpack.c.bf16 %v84_v22, %v83_v20  ;;  %v101_v29 = vld [vmem:[#allocation2 + $0x1a0] sm:$0xff]  ;;  %v102_v30 = vld [vmem:[#allocation2 + $0x1a8] sm:$0xff]  ;;  %v961_v33 = vpack.c.bf16 %v54_v28, %v53_v27  ;;  %v71_v35 = vld [vmem:[#allocation2 + $0xb0] sm:$0xff] }
  0x1b   :  { %988 = vmatprep.subr.bf16.mxu1 %v987_v21  ;;  %v85_v31 = vld [vmem:[#allocation2 + $0x120] sm:$0xff]  ;;  %v86_v32 = vld [vmem:[#allocation2 + $0x128] sm:$0xff]  ;;  %958 = vmatpush3.bf16.msra.mxu0 %v957_v17  ;;  %v991_v34 = vpack.c.bf16 %v102_v30, %v101_v29  ;;  %v72_v36 = vld [vmem:[#allocation2 + $0xb8] sm:$0xff]  ;;  %v1230_v21 = vsub.s32 %v168_v2, %v170_v3 }
  0x1c   :  { %v55_v37 = vld [vmem:[#allocation2 + $0x30] sm:$0xff]  ;;  %960 = vmatprep.subr.bf16.mxu0 %v959_v26  ;;  %v993_v38 = vpack.c.bf16 %v86_v32, %v85_v31  ;;  %v963_v39 = vpack.c.bf16 %v72_v36, %v71_v35  ;;  %v56_v40 = vld [vmem:[#allocation2 + $0x38] sm:$0xff]  ;;  %v73_v46 = vld [vmem:[#allocation2 + $0xc0] sm:$0xff] }
  0x1d   :  { %990 = vmatpush3.bf16.msra.mxu1 %v989_v25  ;;  %v103_v41 = vld [vmem:[#allocation2 + $0x1b0] sm:$0xff]  ;;  %v104_v42 = vld [vmem:[#allocation2 + $0x1b8] sm:$0xff]  ;;  %v74_v47 = vld [vmem:[#allocation2 + $0xc8] sm:$0xff]  ;;  %v965_v48 = vpack.c.bf16 %v56_v40, %v55_v37 }
  0x1e   :  { %992 = vmatprep.subr.bf16.mxu1 %v991_v34  ;;  %v995_v43 = vpack.c.bf16 %v104_v42, %v103_v41  ;;  %v87_v44 = vld [vmem:[#allocation2 + $0x130] sm:$0xff]  ;;  %v88_v45 = vld [vmem:[#allocation2 + $0x138] sm:$0xff]  ;;  %v105_v49 = vld [vmem:[#allocation2 + $0x1c0] sm:$0xff]  ;;  %v967_v55 = vpack.c.bf16 %v74_v47, %v73_v46 }
  0x1f   :  { %962 = vmatpush3.bf16.msra.mxu0 %v961_v33  ;;  %v106_v50 = vld [vmem:[#allocation2 + $0x1c8] sm:$0xff]  ;;  %v997_v54 = vpack.c.bf16 %v88_v45, %v87_v44  ;;  %v57_v56 = vld [vmem:[#allocation2 + $0x40] sm:$0xff]  ;;  %v75_v61 = vld [vmem:[#allocation2 + $0xd0] sm:$0xff] }
  0x20   :  { %964 = vmatprep.subr.bf16.mxu0 %v963_v39  ;;  %v58_v57 = vld [vmem:[#allocation2 + $0x48] sm:$0xff]  ;;  %v89_v58 = vld [vmem:[#allocation2 + $0x140] sm:$0xff]  ;;  %v999_v59 = vpack.c.bf16 %v106_v50, %v105_v49  ;;  %v76_v62 = vld [vmem:[#allocation2 + $0xd8] sm:$0xff] }
  0x21   :  { %994 = vmatpush3.bf16.msra.mxu1 %v993_v38  ;;  %v90_v60 = vld [vmem:[#allocation2 + $0x148] sm:$0xff]  ;;  %v107_v63 = vld [vmem:[#allocation2 + $0x1d0] sm:$0xff]  ;;  %v108_v0 = vld [vmem:[#allocation2 + $0x1d8] sm:$0xff]  ;;  %v969_v1 = vpack.c.bf16 %v58_v57, %v57_v56  ;;  %v971_v5 = vpack.c.bf16 %v76_v62, %v75_v61 }
  0x22   :  { %996 = vmatprep.subr.bf16.mxu1 %v995_v43  ;;  %v1001_v4 = vpack.c.bf16 %v90_v60, %v89_v58  ;;  %v59_v6 = vld [vmem:[#allocation2 + $0x50] sm:$0xff]  ;;  %v60_v7 = vld [vmem:[#allocation2 + $0x58] sm:$0xff]  ;;  %v1003_v9 = vpack.c.bf16 %v108_v0, %v107_v63  ;;  %v77_v11 = vld [vmem:[#allocation2 + $0xe0] sm:$0xff]  ;;  %v1172_v63 = vmov 0.0|0.0  }
  0x23   :  { %966 = vmatpush3.bf16.msra.mxu0 %v965_v48  ;;  %v91_v8 = vld [vmem:[#allocation2 + $0x150] sm:$0xff]  ;;  %v92_v10 = vld [vmem:[#allocation2 + $0x158] sm:$0xff]  ;;  %v78_v12 = vld [vmem:[#allocation2 + $0xe8] sm:$0xff]  ;;  %v973_v17 = vpack.c.bf16 %v60_v7, %v59_v6 }
  0x24   :  { %968 = vmatprep.subr.bf16.mxu0 %v967_v55  ;;  %v61_v13 = vld [vmem:[#allocation2 + $0x60] sm:$0xff]  ;;  %v62_v14 = vld [vmem:[#allocation2 + $0x68] sm:$0xff]  ;;  %v79_v20 = vld [vmem:[#allocation2 + $0xf0] sm:$0xff]  ;;  %v1005_v22 = vpack.c.bf16 %v92_v10, %v91_v8  ;;  %v975_v23 = vpack.c.bf16 %v78_v12, %v77_v11  ;;  %v1174_v10 = vmov 0.0  }
  0x25   :  { %998 = vmatpush3.bf16.msra.mxu1 %v997_v54  ;;  %v109_v15 = vld [vmem:[#allocation2 + $0x1e0] sm:$0xff]  ;;  %v110_v16 = vld [vmem:[#allocation2 + $0x1e8] sm:$0xff]  ;;  %v80_v25 = vld [vmem:[#allocation2 + $0xf8] sm:$0xff]  ;;  %v977_v30 = vpack.c.bf16 %v62_v14, %v61_v13 }
  0x26   :  { %1000 = vmatprep.subr.bf16.mxu1 %v999_v59  ;;  %v93_v18 = vld [vmem:[#allocation2 + $0x160] sm:$0xff]  ;;  %v94_v19 = vld [vmem:[#allocation2 + $0x168] sm:$0xff]  ;;  %v1007_v24 = vpack.c.bf16 %v110_v16, %v109_v15  ;;  %v111_v28 = vld [vmem:[#allocation2 + $0x1f0] sm:$0xff]  ;;  %v979_v36 = vpack.c.bf16 %v80_v25, %v79_v20 }
  0x27   :  { %970 = vmatpush3.bf16.msra.mxu0 %v969_v1  ;;  %v1108_v26 = vld [vmem:[%s1401_s0] ss:$14 sps:$4 sm:$0xff]   ;;  %v1110_v27 = vld [vmem:[%s1401_s0 + $0x1c] ss:$14 sps:$4 sm:$0xff]   ;;  %v1112_v33 = vld [vmem:[%s1401_s0 + $0x4] ss:$14 sps:$4 sm:$0xff]   ;;  %v1009_v35 = vpack.c.bf16 %v94_v19, %v93_v18 }
  0x28   :  { %972 = vmatprep.subr.bf16.mxu0 %v971_v5  ;;  %v112_v29 = vld [vmem:[#allocation2 + $0x1f8] sm:$0xff]  ;;  %v172_v31 = vrot.slane %v1108_v26, %v1230_v21  ;;  %v186_v32 = vrot.slane %v1110_v27, %v1230_v21  ;;  %v1113_v34 = vld [vmem:[%s1401_s0 + $0x20] ss:$14 sps:$4 sm:$0xff]   ;;  %v179_v45 = vrot.slane %v1112_v33, %v1230_v21  ;;  %v1117_v7 = vld [vmem:[%s1401_s0 + $0x24] ss:$14 sps:$4 sm:$0xff]  }
  0x29   :  { %1002 = vmatpush3.bf16.msra.mxu1 %v1001_v4  ;;  %v63_v37 = vld [vmem:[#allocation2 + $0x70] sm:$0xff]  ;;  %v64_v38 = vld [vmem:[#allocation2 + $0x78] sm:$0xff]  ;;  %v1011_v40 = vpack.c.bf16 %v112_v29, %v111_v28  ;;  %v129_v43 = vld [vmem:[#allocation2 + $0x280] sm:$0xff]  ;;  %v193_v46 = vrot.slane %v1113_v34, %v1230_v21  ;;  %v222_v16 = vrot.slane %v1117_v7, %v1230_v21 }
  0x2a   :  { %1004 = vmatprep.subr.bf16.mxu1 %v1003_v9  ;;  %v95_v39 = vld [vmem:[#allocation2 + $0x170] sm:$0xff]  ;;  %v195_v41 = vcombine.high %v172_v31, %v186_v32  ;;  %v96_v42 = vld [vmem:[#allocation2 + $0x178] sm:$0xff]  ;;  %v130_v44 = vld [vmem:[#allocation2 + $0x288] sm:$0xff]  ;;  %v981_v47 = vpack.c.bf16 %v64_v38, %v63_v37  ;;  %v194_v55 = vcombine.low %v172_v31, %v186_v32 }
  0x2b   :  { %974 = vmatpush3.bf16.msra.mxu0 %v973_v17  ;;  %v197_v48 = vcombine.high %v179_v45, %v193_v46  ;;  %v1013_v49 = vpack.c.bf16 %v96_v42, %v95_v39  ;;  %v1015_v50 = vpack.c.bf16 %v130_v44, %v129_v43  ;;  %v113_v51 = vld [vmem:[#allocation2 + $0x200] sm:$0xff]  ;;  %v114_v52 = vld [vmem:[#allocation2 + $0x208] sm:$0xff]  ;;  %v131_v53 = vld [vmem:[#allocation2 + $0x290] sm:$0xff]  ;;  %v196_v57 = vcombine.low %v179_v45, %v193_v46 }
  0x2c   :  { %976 = vmatprep.subr.bf16.mxu0 %v975_v23  ;;  %306 = vmatprep.mubr.f32.mxu0 %v195_v41  ;;  %v132_v54 = vld [vmem:[#allocation2 + $0x298] sm:$0xff]  ;;  %v1017_v56 = vpack.c.bf16 %v114_v52, %v113_v51  ;;  %v115_v59 = vld [vmem:[#allocation2 + $0x210] sm:$0xff]  ;;  %v133_v61 = vld [vmem:[#allocation2 + $0x2a0] sm:$0xff] }
  0x2d   :  { %1006 = vmatpush3.bf16.msra.mxu1 %v1005_v22  ;;  %376 = vmatprep.mubr.f32.mxu1 %v197_v48  ;;  %v1019_v58 = vpack.c.bf16 %v132_v54, %v131_v53  ;;  %v116_v60 = vld [vmem:[#allocation2 + $0x218] sm:$0xff]  ;;  %v134_v62 = vld [vmem:[#allocation2 + $0x2a8] sm:$0xff]  ;;  %v117_v0 = vld [vmem:[#allocation2 + $0x220] sm:$0xff] }
  0x2e   :  { %1008 = vmatprep.subr.bf16.mxu1 %v1007_v24  ;;  %v118_v1 = vld [vmem:[#allocation2 + $0x228] sm:$0xff]  ;;  %v1021_v2 = vpack.c.bf16 %v116_v60, %v115_v59  ;;  %v145_v5 = vld [vmem:[#allocation2 + $0x300] sm:$0xff]  ;;  %v1023_v6 = vpack.c.bf16 %v134_v62, %v133_v61  ;;  %v135_v11 = vld [vmem:[#allocation2 + $0x2b0] sm:$0xff] }
  0x2f   :  { %978 = vmatpush3.bf16.msra.mxu0 %v977_v30  ;;  %v1114_v3 = vld [vmem:[%s1401_s0 + $0x8] ss:$14 sps:$4 sm:$0xff]   ;;  %v1116_v4 = vld [vmem:[%s1401_s0 + $0xc] ss:$14 sps:$4 sm:$0x33]   ;;  %v1025_v18 = vpack.c.bf16 %v118_v1, %v117_v0  ;;  %v137_v25 = vld [vmem:[#allocation2 + $0x2c0] sm:$0xff] }
  0x30   :  { %980 = vmatprep.subr.bf16.mxu0 %v979_v36  ;;  %v1119_v8 = vld [vmem:[%s1401_s0 + $0x28] ss:$14 sps:$4 sm:$0x33]   ;;  %v136_v12 = vld [vmem:[#allocation2 + $0x2b8] sm:$0xff]  ;;  %v208_v13 = vrot.slane %v1114_v3, %v1230_v21  ;;  %v215_v14 = vrot.slane %v1116_v4, %v1230_v21  ;;  %v121_v28 = vld [vmem:[#allocation2 + $0x240] sm:$0xff] }
  0x31   :  { %1010 = vmatpush3.bf16.msra.mxu1 %v1009_v35  ;;  %v146_v9 = vld [vmem:[#allocation2 + $0x308] sm:$0xff]  ;;  %v229_v17 = vrot.slane %v1119_v8, %v1230_v21  ;;  %v1027_v19 = vpack.c.bf16 %v136_v12, %v135_v11  ;;  %v119_v20 = vld [vmem:[#allocation2 + $0x230] sm:$0xff]  ;;  %v120_v22 = vld [vmem:[#allocation2 + $0x238] sm:$0xff] }
  0x32   :  { %1012 = vmatprep.subr.bf16.mxu1 %v1011_v40  ;;  %v1048_v15 = vpack.c.bf16 %v146_v9, %v145_v5  ;;  %v231_v23 = vcombine.high %v208_v13, %v222_v16  ;;  %v138_v26 = vld [vmem:[#allocation2 + $0x2c8] sm:$0xff]  ;;  %v1029_v27 = vpack.c.bf16 %v120_v22, %v119_v20  ;;  %v139_v30 = vld [vmem:[#allocation2 + $0x2d0] sm:$0xff]  ;;  %v140_v31 = vld [vmem:[#allocation2 + $0x2d8] sm:$0xff] }
  0x33   :  { %982 = vmatpush3.bf16.msra.mxu0 %v981_v47  ;;  %v232_v24 = vcombine.low %v215_v14, %v229_v17  ;;  %v1031_v21 = vpack.c.bf16 %v138_v26, %v137_v25  ;;  %v122_v29 = vld [vmem:[#allocation2 + $0x248] sm:$0xff]  ;;  %v1035_v33 = vpack.c.bf16 %v140_v31, %v139_v30  ;;  %v123_v34 = vld [vmem:[#allocation2 + $0x250] sm:$0xff]  ;;  %v124_v35 = vld [vmem:[#allocation2 + $0x258] sm:$0xff] }
  0x34   :  { %1016 = vmatprep.subr.bf16.mxu0 %v1015_v50  ;;  %v1033_v32 = vpack.c.bf16 %v122_v29, %v121_v28  ;;  %v141_v36 = vld [vmem:[#allocation2 + $0x2e0] sm:$0xff]  ;;  %v142_v37 = vld [vmem:[#allocation2 + $0x2e8] sm:$0xff]  ;;  %v1037_v38 = vpack.c.bf16 %v124_v35, %v123_v34  ;;  %v143_v42 = vld [vmem:[#allocation2 + $0x2f0] sm:$0xff] }
  0x35   :  { %1014 = vmatpush3.bf16.msra.mxu1 %v1013_v49  ;;  %v1039_v39 = vpack.c.bf16 %v142_v37, %v141_v36  ;;  %v125_v40 = vld [vmem:[#allocation2 + $0x260] sm:$0xff]  ;;  %v126_v41 = vld [vmem:[#allocation2 + $0x268] sm:$0xff]  ;;  %v144_v43 = vld [vmem:[#allocation2 + $0x2f8] sm:$0xff]  ;;  %v230_v49 = vcombine.low %v208_v13, %v222_v16 }
  0x36   :  { %1047 = vmatprep.subr.bf16.mxu1 %v1172_v63  ;;  %307 = vmatmul.mubr.f32.vlgmr.msra.gmra.mrb[0].mxu0 %v194_v55  ;;  %v1041_v44 = vpack.c.bf16 %v126_v41, %v125_v40  ;;  %v1043_v45 = vpack.c.bf16 %v144_v43, %v143_v42  ;;  %v127_v46 = vld [vmem:[#allocation2 + $0x270] sm:$0xff]  ;;  %v128_v47 = vld [vmem:[#allocation2 + $0x278] sm:$0xff]  ;;  %v523_v50 = vld [vmem:[%s1404_s3] sm:$0xff] }
  0x37   :  { %1018 = vmatpush3.bf16.msra.mxu0 %v1017_v56  ;;  %446 = vmatprep.mubr.f32.mxu0 %v231_v23  ;;  %v1045_v48 = vpack.c.bf16 %v128_v47, %v127_v46  ;;  %v524_v51 = vld [vmem:[%s1404_s3 + $0x8] sm:$0xff]  ;;  %v525_v52 = vld [vmem:[%s1404_s3 + $0x10] sm:$0xff]  ;;  %v526_v54 = vld [vmem:[%s1404_s3 + $0x18] sm:$0xff] }
  0x38   :  { %377 = vmatmul.mubr.f32.vlgmr.msra.gmra.mrb[0].mxu1 %v196_v57  ;;  %1020 = vmatprep.subr.bf16.mxu0 %v1019_v58  ;;  %v1051_v53 = vpack.c.bf16 %v524_v51, %v523_v50  ;;  %v1054_v55 = vpack.c.bf16 %v526_v54, %v525_v52  ;;  %v527_v56 = vld [vmem:[%s1404_s3 + $0x20] sm:$0xff]  ;;  %v528_v57 = vld [vmem:[%s1404_s3 + $0x28] sm:$0xff]  ;;  %v529_v59 = vld [vmem:[%s1404_s3 + $0x30] sm:$0xff] }
  0x39   :  { %878 = vmatprep.mubr.msk.f32.mxu1 %vm1173_vm0, %v1174_v10  ;;  %1049 = vmatpush3.bf16.msra.mxu1 %v1048_v15  ;;  %v1057_v58 = vpack.c.bf16 %v528_v57, %v527_v56  ;;  %v530_v60 = vld [vmem:[%s1404_s3 + $0x38] sm:$0xff]  ;;  %v531_v62 = vld [vmem:[%s1404_s3 + $0x40] sm:$0xff]  ;;  %v532_v0 = vld [vmem:[%s1404_s3 + $0x48] sm:$0xff] }
  0x3a   :  { %1050 = vmatprep.subr.bf16.mxu1 %v1172_v63  ;;  %v1060_v61 = vpack.c.bf16 %v530_v60, %v529_v59  ;;  %v1063_v1 = vpack.c.bf16 %v532_v0, %v531_v62  ;;  %v534_v3 = vld [vmem:[%s1404_s3 + $0x58] sm:$0xff]  ;;  %v535_v5 = vld [vmem:[%s1404_s3 + $0x60] sm:$0xff]  ;;  %v537_v8 = vld [vmem:[%s1404_s3 + $0x70] sm:$0xff] }
  0x3b   :  { %1022 = vmatpush3.bf16.msra.mxu0 %v1021_v2  ;;  %v533_v2 = vld [vmem:[%s1404_s3 + $0x50] sm:$0xff]  ;;  %v538_v9 = vld [vmem:[%s1404_s3 + $0x78] sm:$0xff]  ;;  %v617_v11 = vld [vmem:[%s1406_s5] sm:$0xff] }
  0x3c   :  { %1024 = vmatprep.subr.bf16.mxu0 %v1023_v6  ;;  %879 = vmatmul.mubr.msk.f32.vlgmr.msra.gmra.mrb[2].mxu1 %vm239_vm1, %v232_v24  ;;  %v1066_v4 = vpack.c.bf16 %v534_v3, %v533_v2  ;;  %v536_v6 = vld [vmem:[%s1404_s3 + $0x68] sm:$0xff]  ;;  %v619_v13 = vld [vmem:[%s1406_s5 + $0x10] sm:$0xff]  ;;  %v620_v15 = vld [vmem:[%s1406_s5 + $0x18] sm:$0xff] }
  0x3d   :  { %913 = vmatprep.mubr.msk.f32.mxu1 %vm1173_vm0, %v1174_v10  ;;  %1052 = vmatpush3.bf16.msra.mxu1 %v1051_v53  ;;  %v1069_v7 = vpack.c.bf16 %v536_v6, %v535_v5  ;;  %v618_v12 = vld [vmem:[%s1406_s5 + $0x8] sm:$0xff]  ;;  %v1078_v16 = vpack.c.bf16 %v620_v15, %v619_v13  ;;  %v621_v17 = vld [vmem:[%s1406_s5 + $0x20] sm:$0xff]  ;;  %v623_v20 = vld [vmem:[%s1406_s5 + $0x30] sm:$0xff] }
  0x3e   :  { %1053 = vmatprep.subr.bf16.mxu1 %v1172_v63  ;;  %v1075_v14 = vpack.c.bf16 %v618_v12, %v617_v11  ;;  %v624_v22 = vld [vmem:[%s1406_s5 + $0x38] sm:$0xff]  ;;  %v625_v24 = vld [vmem:[%s1406_s5 + $0x40] sm:$0xff]  ;;  %v626_v25 = vld [vmem:[%s1406_s5 + $0x48] sm:$0xff] }
  0x3f   :  { %1026 = vmatpush3.bf16.msra.mxu0 %v1025_v18  ;;  %v622_v18 = vld [vmem:[%s1406_s5 + $0x28] sm:$0xff]  ;;  %v1084_v23 = vpack.c.bf16 %v624_v22, %v623_v20  ;;  %v1087_v26 = vpack.c.bf16 %v626_v25, %v625_v24  ;;  %v629_v29 = vld [vmem:[%s1406_s5 + $0x60] sm:$0xff] }
  0x40   :  { %1028 = vmatprep.subr.bf16.mxu0 %v1027_v19  ;;  %v1081_v19 = vpack.c.bf16 %v622_v18, %v621_v17  ;;  %v630_v30 = vld [vmem:[%s1406_s5 + $0x68] sm:$0xff]  ;;  %v730_v51 = vld [vmem:[%s1405_s4] ss:$0 sm:$0xff] }
  0x41   :  { %1055 = vmatpush3.bf16.msra.mxu1 %v1054_v55  ;;  %v1093_v31 = vpack.c.bf16 %v630_v30, %v629_v29  ;;  %v731_v56 = vld [vmem:[%s1407_s6] ss:$0 sm:$0xff] }
  0x42   :  { %1056 = vmatprep.subr.bf16.mxu1 %v1172_v63 }
  0x43   :  { %1030 = vmatpush3.bf16.msra.mxu0 %v1029_v27  ;;  %v627_v27 = vld [vmem:[%s1406_s5 + $0x50] sm:$0xff] }
  0x44   :  { %1032 = vmatprep.subr.bf16.mxu0 %v1031_v21  ;;  %v628_v21 = vld [vmem:[%s1406_s5 + $0x58] sm:$0xff] }
  0x45   :  { %1058 = vmatpush3.bf16.msra.mxu1 %v1057_v58  ;;  %v1090_v28 = vpack.c.bf16 %v628_v21, %v627_v27 }
  0x46   :  { %1059 = vmatprep.subr.bf16.mxu1 %v1172_v63 }
  0x47   :  { %1034 = vmatpush3.bf16.msra.mxu0 %v1033_v32 }
  0x48   :  { %1036 = vmatprep.subr.bf16.mxu0 %v1035_v33  ;;  %v728_v33 = vld [vmem:[%s1403_s2] ss:$0 sm:$0xff] }
  0x49   :  { %1061 = vmatpush3.bf16.msra.mxu1 %v1060_v61 }
  0x4a   :  { %1062 = vmatprep.subr.bf16.mxu1 %v1172_v63 }
  0x4b   :  { %1038 = vmatpush3.bf16.msra.mxu0 %v1037_v38 }
  0x4c   :  { %1040 = vmatprep.subr.bf16.mxu0 %v1039_v39 }
  0x4d   :  { %1064 = vmatpush3.bf16.msra.mxu1 %v1063_v1 }
  0x4e   :  { %1065 = vmatprep.subr.bf16.mxu1 %v1172_v63 }
  0x4f   :  { %1042 = vmatpush3.bf16.msra.mxu0 %v1041_v44 }
  0x50   :  { %1044 = vmatprep.subr.bf16.mxu0 %v1043_v45 }
  0x51   :  { %1067 = vmatpush3.bf16.msra.mxu1 %v1066_v4 }
  0x52   :  { %1068 = vmatprep.subr.bf16.mxu1 %v1172_v63 }
  0x53   :  { %1046 = vmatpush3.bf16.msra.mxu0 %v1045_v48  ;;  %v631_v48 = vld [vmem:[%s1406_s5 + $0x70] sm:$0xff] }
  0x54   :  { %1074 = vmatprep.subr.bf16.mxu0 %v1172_v63 }
  0x55   :  { %1070 = vmatpush3.bf16.msra.mxu1 %v1069_v7 }
  0x56   :  { %447 = vmatmul.mubr.f32.vlgmr.msra.gmra.mrb[2].mxu0 %v230_v49  ;;  %1071 = vmatprep.subr.bf16.mxu1 %v1172_v63  ;;  %v632_v49 = vld [vmem:[%s1406_s5 + $0x78] sm:$0xff] }
  0x57   :  { %948 = vmatprep.mubr.msk.f32.mxu0 %vm1173_vm0, %v1174_v10  ;;  %v1072_v10 = vpack.c.bf16 %v538_v9, %v537_v8  ;;  %1076 = vmatpush3.bf16.msra.mxu0 %v1075_v14  ;;  %v1096_v50 = vpack.c.bf16 %v632_v49, %v631_v48 }
  0x58   :  { %1077 = vmatprep.subr.bf16.mxu0 %v1172_v63 }
  0x59   :  { %1073 = vmatpush3.bf16.msra.mxu1 %v1072_v10 }
  0x5b   :  { %1079 = vmatpush3.bf16.msra.mxu0 %v1078_v16 }
  0x5c   :  { %1080 = vmatprep.subr.bf16.mxu0 %v1172_v63 }
  0x5f   :  { %1082 = vmatpush3.bf16.msra.mxu0 %v1081_v19 }
  0x60   :  { %1083 = vmatprep.subr.bf16.mxu0 %v1172_v63 }
  0x63   :  { %1085 = vmatpush3.bf16.msra.mxu0 %v1084_v23 }
  0x64   :  { %1086 = vmatprep.subr.bf16.mxu0 %v1172_v63 }
  0x67   :  { %1088 = vmatpush3.bf16.msra.mxu0 %v1087_v26 }
  0x68   :  { %1089 = vmatprep.subr.bf16.mxu0 %v1172_v63 }
  0x6b   :  { %1091 = vmatpush3.bf16.msra.mxu0 %v1090_v28 }
  0x6c   :  { %1092 = vmatprep.subr.bf16.mxu0 %v1172_v63 }
  0x6f   :  { %1094 = vmatpush3.bf16.msra.mxu0 %v1093_v31 }
  0x70   :  { %1095 = vmatprep.subr.bf16.mxu0 %v1172_v63 }
  0x73   :  { %1097 = vmatpush3.bf16.msra.mxu0 %v1096_v50 }
 0x109   :  { %v764_v32 = vpop.f32.mrb[0].mxu0 }
 0x10a   :  { %v765_v34 = vpop.f32.mrb[1].mxu0 }
 0x10b   :  { %v799_v35 = vpop.f32.mrb[0].mxu1  ;;  %v766_v36 = vadd.f32 %v765_v34, %v764_v32 }
 0x10c   :  { %v800_v37 = vpop.f32.mrb[1].mxu1 }
 0x10d   :  { %v801_v38 = vadd.f32 %v800_v37, %v799_v35  ;;  %v309_v39 = vadd.f32 %v766_v36, %v728_v33 }
 0x10f   :  { %v379_v40 = vadd.f32 %v801_v38, %v309_v39  ;;  %v518_v41 = vpop.f32.mrb[2].mxu1 }
 0x110   :  { %v880_v42 = vpop.f32.mrb[3].mxu1 }
 0x129   :  { %v834_v43 = vpop.f32.mrb[2].mxu0 }
 0x12a   :  { %v835_v44 = vpop.f32.mrb[3].mxu0 }
 0x12b   :  { %v836_v45 = vadd.f32 %v835_v44, %v834_v43 }
 0x12d   :  { %v449_v46 = vadd.f32 %v836_v45, %v379_v40 }
 0x12f   :  { %v519_v47 = vadd.f32 %v518_v41, %v449_v46 }
 0x131   :  { %v522_v63 = vmax.f32 %v519_v47, 0.0 }
 0x133   :  { %914 = vmatmul.mubr.f32.vlgmr.msra.gmra.mrb[4].mxu1 %v522_v63 }
 0x206   :  { %v612_v52 = vpop.f32.mrb[4].mxu1 }
 0x207   :  { %v613_v53 = vadd.f32 %v730_v51, %v612_v52  ;;  %v915_v54 = vpop.f32.mrb[5].mxu1 }
 0x209   :  { %v616_v55 = vmax.f32 %v613_v53, 0.0 }
 0x20b   :  { %949 = vmatmul.mubr.f32.vlgmr.msra.gmra.mrb[4].mxu0 %v616_v55 }
 0x2de   :  { %v706_v57 = vpop.f32.mrb[4].mxu0 }
 0x2df   :  { %v707_v58 = vadd.f32 %v731_v56, %v706_v57  ;;  %v950_v59 = vpop.f32.mrb[5].mxu0 }
 0x2e1   :  { %710 = vst [vmem:[#allocation5] sm:$0xff] %v707_v58 }
 0x2e2   :  { %715 = vsyncadd [#allocation4], 96  ;;  %s1175_s5 = smov [#allocation5]  }
 0x2e3   :  { %s716_s22 = sshll.u32 %s1175_s5, 4  ;;  %s717_s22 = int_to_ptr.vmem [resolvable:$true] %s716_s22 }
 0x2e4   :  { %s1142_s23 = scalar_lea.vmem %s717_s22, 32  ;;  %s1146_s4 = scalar_lea.vmem %s717_s22, 128 }
 0x2e5   :  { %p1143_p8 = scmp.ne.s32.totalorder %s717_s22, %s1142_s23  ;;  %p1147_p9 = scmp.lt.s32.totalorder %s717_s22, %s717_s22 }
 0x2e6   :  { %p1148_p10 = scmp.lt.s32.totalorder %s1146_s4, %s1142_s23 }
 0x2e8   :  { %p1149_p11 = por %p1148_p10, %p1147_p9 }
 0x2ea   :  { %p1150_p12 = pnand %p1149_p11, %p1143_p8 }
 0x2ec   :  { %1153 = shalt.err (!%p1150_p12)
}
 0x2ed   :  { %s1154_s6 = scalar_lea.hbm %s1408_s7, 32 }
 0x2ee   :  { %p1155_p13 = scmp.ne.s32.totalorder %s1408_s7, %s1154_s6  ;;  %p1158_p0 = scmp.lt.u32.totalorder %s1154_s6, %s1408_s7 }
 0x2f0   :  { %p1160_p1 = pnand %p1158_p0, %p1155_p13 }
 0x2f2   :  { %1163 = shalt.err (!%p1160_p1)
}
 0x2f3   :  { %s1176_s0 = smov 32   ;;  %s1177_s30 = smov 2  }
 0x2f4   :  { %722 = dma.vmem_to_hbm [thread:$0]  %s717_s22, 32, %s1408_s7, [#allocation4], %s1176_s0, %s1176_s0, %s1177_s30  }
 0x2f5   :  { %1166 = dma.done.wait [#allocation4], 128  }
 0x2f6   :  { %1167 = vsyncadd [#allocation4], 4294967168 }
 0x2f7   :  { %726 = vsyncpa [#allocation3], 1 }
 0x2f8   :  { %727 = vsyncpa [#allocation4], 1 }

</bundles_post_ra>
